<compile_context>
chip_gen: v7x
topology: tpu7x:2x2x1
jax: 0.10.0
libtpu: 0.0.40
codegen_flags: <defaults>
</compile_context>

<pallas_src>
import math
from functools import partial

import jax
import jax.numpy as jnp
from jax.experimental import pallas as pl
from jax.experimental.pallas import tpu as pltpu


# -----------------------------------------------------------------------------
# Kernel 1: MedianPool2d (3x3, stride 1, 'same', reflect pad)
# TODO(synk): original module draws pooling_rate = random.randint(1, 3) at
#             construction time; we fix the kernel size to 3 deterministically.
# -----------------------------------------------------------------------------
def _sort2(a, b):
    return jnp.minimum(a, b), jnp.maximum(a, b)


def _median_pool3_kernel(xpad_ref, out_ref):
    Pp = out_ref.shape[-1]
    p = [xpad_ref[:, dy:dy + Pp, dx:dx + Pp] for dy in range(3) for dx in range(3)]
    # Paeth median-of-9 compare/exchange network (19 exchanges), pure VPU work.
    p[1], p[2] = _sort2(p[1], p[2]); p[4], p[5] = _sort2(p[4], p[5]); p[7], p[8] = _sort2(p[7], p[8])
    p[0], p[1] = _sort2(p[0], p[1]); p[3], p[4] = _sort2(p[3], p[4]); p[6], p[7] = _sort2(p[6], p[7])
    p[1], p[2] = _sort2(p[1], p[2]); p[4], p[5] = _sort2(p[4], p[5]); p[7], p[8] = _sort2(p[7], p[8])
    p[0], p[3] = _sort2(p[0], p[3]); p[5], p[8] = _sort2(p[5], p[8]); p[4], p[7] = _sort2(p[4], p[7])
    p[3], p[6] = _sort2(p[3], p[6]); p[1], p[4] = _sort2(p[1], p[4]); p[2], p[5] = _sort2(p[2], p[5])
    p[4], p[7] = _sort2(p[4], p[7]); p[4], p[2] = _sort2(p[4], p[2]); p[6], p[4] = _sort2(p[6], p[4])
    p[4], p[2] = _sort2(p[4], p[2])
    out_ref[...] = p[4]


def median_pool3(patch):
    C, Pp, _ = patch.shape
    xpad = jnp.pad(patch, ((0, 0), (1, 1), (1, 1)), mode="reflect")
    return pl.pallas_call(
        _median_pool3_kernel,
        grid=(1,),
        in_specs=[pl.BlockSpec((C, Pp + 2, Pp + 2), lambda i: (0, 0, 0))],
        out_specs=pl.BlockSpec((C, Pp, Pp), lambda i: (0, 0, 0)),
        out_shape=jax.ShapeDtypeStruct((C, Pp, Pp), jnp.float32),
    )(xpad)


# -----------------------------------------------------------------------------
# Host-side (plain JAX) precompute: batch-shared RandomPerspective warp matrix.
# -----------------------------------------------------------------------------
def _perspective_coeffs(startpoints, endpoints):
    # torchvision _get_perspective_coeffs: homography mapping output (endpoint)
    # pixel coords to source (startpoint) pixel coords.
    rows, rhs = [], []
    one = jnp.float32(1.0)
    zero = jnp.float32(0.0)
    for i in range(4):
        ex, ey = endpoints[i, 0], endpoints[i, 1]
        sx, sy = startpoints[i, 0], startpoints[i, 1]
        rows.append(jnp.stack([ex, ey, one, zero, zero, zero, -sx * ex, -sx * ey]))
        rows.append(jnp.stack([zero, zero, zero, ex, ey, one, -sy * ex, -sy * ey]))
        rhs.extend([sx, sy])
    A = jnp.stack(rows)
    bvec = jnp.stack(rhs)
    return jnp.linalg.solve(A, bvec)


def _perspective_w1(coef, S, Pp, top, left):
    """W1_eff [Pp*Pp, S*S] and mask row m1 [1, S*S] reproducing torchvision
       F.perspective (bilinear, padding_mode='zeros', align_corners=False,
       fill=0 mask channel) applied to the zero-padded patch image. The fill
       mask (mrow) is folded into the columns of W1.  Plain JAX, computed once
       per forward call (shared by the whole batch)."""
    a, b, c, d, e, f, g, h = [coef[i] for i in range(8)]
    Q = S * S
    P = Pp * Pp
    q = jnp.arange(Q, dtype=jnp.int32)
    xo = (q % S).astype(jnp.float32)
    yo = (q // S).astype(jnp.float32)
    xp = xo + 0.5
    yp = yo + 0.5
    inv_den = 1.0 / (g * xp + h * yp + 1.0)
    ix = (a * xp + b * yp + c) * inv_den - 0.5     # grid_sample, align_corners=False
    iy = (d * xp + e * yp + f) * inv_den - 0.5
    x0f = jnp.floor(ix); y0f = jnp.floor(iy)
    fx = ix - x0f; fy = iy - y0f
    x0 = x0f.astype(jnp.int32); y0 = y0f.astype(jnp.int32)
    x1 = x0 + 1; y1 = y0 + 1
    corners = ((y0, x0, (1 - fx) * (1 - fy)),
               (y0, x1, fx * (1 - fy)),
               (y1, x0, (1 - fx) * fy),
               (y1, x1, fx * fy))
    w1 = jnp.zeros((P, Q), jnp.float32)
    mrow = jnp.zeros((Q,), jnp.float32)
    qidx = jnp.arange(Q)
    for yc, xc, wc in corners:
        inb = (xc >= 0) & (xc < S) & (yc >= 0) & (yc < S)
        mrow = mrow + jnp.where(inb, wc, 0.0)                       # fill=0 mask
        inpatch = (xc >= left) & (xc < left + Pp) & (yc >= top) & (yc < top + Pp)
        ps = jnp.clip((yc - top) * Pp + (xc - left), 0, P - 1)
        w1 = w1.at[ps, qidx].add(jnp.where(inpatch, wc, 0.0))
    w1_eff = w1 * mrow[None, :]                                      # fold fill mask
    m1row = jnp.sum(w1_eff, axis=0, keepdims=True)                   # warped unit mask
    return w1_eff, m1row


# -----------------------------------------------------------------------------
# In-kernel helper: affine-warp weight matrix (grid_sample border, ac=True,
# affine_grid ac=False), built with a SHARED (Q,Q) iota and 4 chained selects.
# -----------------------------------------------------------------------------
def _affine_border_wmat(theta, S, piota):
    t00, t01, t02, t10, t11, t12 = theta
    Q = S * S
    q = jax.lax.broadcasted_iota(jnp.int32, (1, Q), 1)
    yo = (q // S).astype(jnp.float32)
    xo = (q % S).astype(jnp.float32)
    xb = (2.0 * xo + 1.0) / S - 1.0            # affine_grid base (align_corners=False)
    yb = (2.0 * yo + 1.0) / S - 1.0
    gx = t00 * xb + t01 * yb + t02
    gy = t10 * xb + t11 * yb + t12
    ix = jnp.clip((gx + 1.0) * 0.5 * (S - 1), 0.0, S - 1.0)   # ac=True, border clamp
    iy = jnp.clip((gy + 1.0) * 0.5 * (S - 1), 0.0, S - 1.0)
    x0f = jnp.floor(ix); y0f = jnp.floor(iy)
    fx = ix - x0f; fy = iy - y0f
    idx00 = y0f.astype(jnp.int32) * S + x0f.astype(jnp.int32)   # (1, Q)
    w00 = (1.0 - fx) * (1.0 - fy)
    w01 = fx * (1.0 - fy)
    w10 = (1.0 - fx) * fy
    w11 = fx * fy
    # Chained selects: the 4 unclamped corner positions are distinct per column,
    # and any position that walks off the image (x0==S-1 / y0==S-1 after the
    # border clip) carries an EXACTLY-zero weight (fx==0 / fy==0), so writing it
    # is harmless -> no clamp fix-up and no separate adds needed.
    wmat = jnp.where(piota == idx00, w00, 0.0)
    wmat = jnp.where(piota == idx00 + 1, w01, wmat)
    wmat = jnp.where(piota == idx00 + S, w10, wmat)
    wmat = jnp.where(piota == idx00 + S + 1, w11, wmat)
    return wmat


# -----------------------------------------------------------------------------
# Kernel 2: the per-(batch, label) patch transform pipeline
# -----------------------------------------------------------------------------
def _patch_transform_kernel(params_ref, patch_ref, noise_ref, w1_ref, m1_ref,
                            out_ref, *, S):
    n = pl.program_id(0)
    contrast   = params_ref[n, 0]
    brightness = params_ref[n, 1]
    maskval    = params_ref[n, 2]
    wsc        = params_ref[n, 3]
    th = tuple(params_ref[n, 4 + i] for i in range(6))
    Q = S * S

    # contrast / brightness / noise / clamp (elementwise hot path), (3, Pp*Pp)
    adv = jnp.clip(patch_ref[...] * contrast + brightness + noise_ref[0],
                   1e-6, 0.99999)

    # warp 1: batch-shared RandomPerspective, matrix precomputed outside.
    s1 = jnp.dot(adv, w1_ref[...], preferred_element_type=jnp.float32)   # (3, Q)

    # Collapse the mask path: one extra row (unit mask already warped by w1);
    # every remaining warp acts on the stacked (4, Q) operand with ONE dot.
    x = jnp.concatenate([s1, m1_ref[...]], axis=0)                        # (4, Q)

    # Shared row-index iota for both per-n warp matrices.
    piota = jax.lax.broadcasted_iota(jnp.int32, (Q, Q), 0)

    # warp 2: theta4 = [[w,0,0],[0,w,0]]  (border, align_corners=True)
    w2 = _affine_border_wmat((wsc, 0.0, 0.0, 0.0, wsc, 0.0), S, piota)
    x = jnp.dot(x, w2, preferred_element_type=jnp.float32)

    # warp 3: rotation / scale / translation theta  (border, align_corners=True)
    w3 = _affine_border_wmat(th, S, piota)
    x = jnp.dot(x, w3, preferred_element_type=jnp.float32)

    adv_t = jnp.clip(x[0:3], 1e-5, 0.99999)
    msk_t = maskval * x[3:4]            # warps are linear -> maskval applied last
    out_ref[0] = adv_t * msk_t


# -----------------------------------------------------------------------------
# Glue: deterministic replacements for torch RNG + parameter packing
# -----------------------------------------------------------------------------
def patch_transformer_forward(adv_patch, lab_batch, img_size, key,
                              do_rotate=True, rand_loc=True):
    adv_patch = adv_patch.astype(jnp.float32)
    lab_batch = lab_batch.astype(jnp.float32)
    _, Pp, _ = adv_patch.shape
    B, L, _ = lab_batch.shape
    N = B * L
    S = int(img_size)

    # median pool (patch size is preserved)
    pooled = median_pool3(adv_patch)
    patch_flat = pooled.reshape(3, Pp * Pp)

    # ConstantPad2d((int(pad+.5), int(pad), int(pad+.5), int(pad)), 0)
    pad = (S - Pp) / 2.0
    left = int(pad + 0.5); right = int(pad)
    top = int(pad + 0.5);  bottom = int(pad)
    assert Pp + left + right == S and Pp + top + bottom == S

    ks = jax.random.split(key, 10)
    contrast = jax.random.uniform(ks[0], (N,), minval=0.8, maxval=1.0)
    brightness = jax.random.uniform(ks[1], (N,), minval=-0.2, maxval=0.0)
    noise = jax.random.uniform(ks[2], (N, 3, Pp * Pp), minval=-1.0, maxval=1.0) * 0.1

    cls_ids = lab_batch[:, :, 0]
    cls_ids = cls_ids.at[:, 0].set(0.0)         # cls_ids[:, 0, 0] = 0
    maskval = (1.0 - cls_ids).reshape(N)

    if do_rotate:
        angle = jax.random.uniform(ks[3], (N,), minval=-45.0 / 180.0 * math.pi,
                                   maxval=45.0 / 180.0 * math.pi)
    else:
        angle = jnp.zeros((N,), jnp.float32)

    w_sc = lab_batch[:, :, 3] * img_size
    h_sc = lab_batch[:, :, 4] * img_size
    target_size = jnp.sqrt((w_sc * 0.2) ** 2 + (h_sc * 0.2) ** 2).reshape(N)
    target_x = lab_batch[:, :, 1].reshape(N)
    target_y = lab_batch[:, :, 2].reshape(N)
    toff_x = lab_batch[:, :, 3].reshape(N)
    toff_y = lab_batch[:, :, 4].reshape(N)
    if rand_loc:
        target_x = target_x + toff_x * jax.random.uniform(ks[4], (N,), minval=-0.4, maxval=0.4)
        target_y = target_y + toff_y * jax.random.uniform(ks[5], (N,), minval=-0.4, maxval=0.4)
    target_y = target_y - 0.05
    # NaN guard: zero-area (padded) label rows would give scale=0 -> inf theta.
    scale = jnp.maximum(target_size / Pp, 1e-6)
    wscale = jax.random.uniform(ks[6], (N,), minval=1.0, maxval=1.5)

    tx = (-target_x + 0.5) * 2.0
    ty = (-target_y + 0.5) * 2.0
    sin = jnp.sin(angle); cos = jnp.cos(angle)
    theta_cols = jnp.stack([cos / scale, sin / scale,
                            tx * cos / scale + ty * sin / scale,
                            -sin / scale, cos / scale,
                            -tx * sin / scale + ty * cos / scale], axis=1)   # [N, 6]

    params = jnp.zeros((N, 16), jnp.float32)
    params = params.at[:, 0].set(contrast)
    params = params.at[:, 1].set(brightness)
    params = params.at[:, 2].set(maskval)
    params = params.at[:, 3].set(wscale)
    params = params.at[:, 4:10].set(theta_cols)

    # RandomPerspective(distortion_scale=0.5, p=0.8): one transform per batch.
    half = S // 2
    bw = int(0.5 * half); bh = int(0.5 * half)
    ck = jax.random.split(ks[7], 8)
    topleft  = jnp.stack([jax.random.uniform(ck[0], (), minval=0.0, maxval=float(bw)),
                          jax.random.uniform(ck[1], (), minval=0.0, maxval=float(bh))])
    topright = jnp.stack([jax.random.uniform(ck[2], (), minval=float(S - 1 - bw), maxval=float(S - 1)),
                          jax.random.uniform(ck[3], (), minval=0.0, maxval=float(bh))])
    botright = jnp.stack([jax.random.uniform(ck[4], (), minval=float(S - 1 - bw), maxval=float(S - 1)),
                          jax.random.uniform(ck[5], (), minval=float(S - 1 - bh), maxval=float(S - 1))])
    botleft  = jnp.stack([jax.random.uniform(ck[6], (), minval=0.0, maxval=float(bw)),
                          jax.random.uniform(ck[7], (), minval=float(S - 1 - bh), maxval=float(S - 1))])
    startpoints = jnp.array([[0.0, 0.0], [S - 1.0, 0.0], [S - 1.0, S - 1.0], [0.0, S - 1.0]],
                            dtype=jnp.float32)
    endpoints = jnp.stack([topleft, topright, botright, botleft])
    coeffs = _perspective_coeffs(startpoints, endpoints)
    apply_persp = jax.random.uniform(ks[8], ()) < 0.8
    identity = jnp.array([1.0, 0.0, 0.0, 0.0, 1.0, 0.0, 0.0, 0.0], jnp.float32)
    pcoef = jnp.where(apply_persp, coeffs, identity).astype(jnp.float32)

    # Batch-shared perspective warp matrix + warped unit mask: hoisted out of
    # the grid kernel (it is identical for every n).
    w1_eff, m1row = _perspective_w1(pcoef, S, Pp, top, left)

    kernel = partial(_patch_transform_kernel, S=S)
    out_flat = pl.pallas_call(
        kernel,
        grid=(N,),
        in_specs=[
            pl.BlockSpec(memory_space=pltpu.MemorySpace.SMEM),       # params  [N, 16]
            pl.BlockSpec((3, Pp * Pp), lambda n: (0, 0)),            # pooled patch (shared)
            pl.BlockSpec((1, 3, Pp * Pp), lambda n: (n, 0, 0)),      # per-image noise
            pl.BlockSpec((Pp * Pp, S * S), lambda n: (0, 0)),        # W1 (shared, resident)
            pl.BlockSpec((1, S * S), lambda n: (0, 0)),              # mask row after warp 1
        ],
        out_specs=pl.BlockSpec((1, 3, S * S), lambda n: (n, 0, 0)),
        out_shape=jax.ShapeDtypeStruct((N, 3, S * S), jnp.float32),
        compiler_params=pltpu.CompilerParams(
            dimension_semantics=("parallel",),      # each n writes its own block
            vmem_limit_bytes=40 * 1024 * 1024),
    )(params, patch_flat, noise.astype(jnp.float32), w1_eff, m1row)

    return out_flat.reshape(B, L, 3, S, S)


# -----------------------------------------------------------------------------
if __name__ == "__main__":
    key = jax.random.PRNGKey(0)
    k1, k2, k3 = jax.random.split(key, 3)

    adv_patch = jax.random.uniform(k1, (3, 16, 16), dtype=jnp.float32)
    B, L = 2, 4
    cls = jax.random.bernoulli(k2, 0.5, (B, L, 1)).astype(jnp.float32)   # cls ids in {0, 1}
    xywh = jax.random.uniform(k3, (B, L, 4), minval=0.2, maxval=0.6, dtype=jnp.float32)
    lab_batch = jnp.concatenate([cls, xywh], axis=-1)                    # [B, L, 5]
    img_size = 32

    out = patch_transformer_forward(adv_patch, lab_batch, img_size,
                                    jax.random.PRNGKey(42),
                                    do_rotate=True, rand_loc=True)
    out = jax.block_until_ready(out)
    assert out.shape == (B, L, 3, img_size, img_size)
    assert bool(jnp.all(jnp.isfinite(out)))
    print("KERNEL_OK")
</pallas_src>

<mosaic_0001>
module attributes {stable_mosaic.version = 11 : i64} {
  func.func @_median_pool3_kernel(%arg0: i32, %arg1: memref<3x18x18xf32, #tpu.memory_space<vmem>>, %arg2: memref<3x16x16xf32, #tpu.memory_space<vmem>>) attributes {dimension_semantics = [#tpu.dimension_semantics<arbitrary>], iteration_bounds = array<i64: 1>, scalar_prefetch = 0 : i64, scratch_operands = 0 : i64, tpu.core_type = #tpu.core_type<tc>, window_params = [{pipeline_mode = #tpu.pipeline_mode<synchronous>, transform_indices = @transform_0, window_bounds = array<i64: 3, 18, 18>}, {pipeline_mode = #tpu.pipeline_mode<synchronous>, transform_indices = @transform_1, window_bounds = array<i64: 3, 16, 16>}]} {
    %c0 = arith.constant 0 : index
    %c0_0 = arith.constant 0 : index
    %c0_1 = arith.constant 0 : index
    %0 = vector.load %arg1[%c0, %c0_0, %c0_1] : memref<3x18x18xf32, #tpu.memory_space<vmem>>, vector<3x16x16xf32>
    %c0_2 = arith.constant 0 : index
    %c0_3 = arith.constant 0 : index
    %c1 = arith.constant 1 : index
    %1 = vector.load %arg1[%c0_2, %c0_3, %c1] : memref<3x18x18xf32, #tpu.memory_space<vmem>>, vector<3x16x16xf32>
    %c0_4 = arith.constant 0 : index
    %c0_5 = arith.constant 0 : index
    %c2 = arith.constant 2 : index
    %2 = vector.load %arg1[%c0_4, %c0_5, %c2] : memref<3x18x18xf32, #tpu.memory_space<vmem>>, vector<3x16x16xf32>
    %c0_6 = arith.constant 0 : index
    %c1_7 = arith.constant 1 : index
    %c0_8 = arith.constant 0 : index
    %3 = vector.load %arg1[%c0_6, %c1_7, %c0_8] : memref<3x18x18xf32, #tpu.memory_space<vmem>>, vector<3x16x16xf32>
    %c0_9 = arith.constant 0 : index
    %c1_10 = arith.constant 1 : index
    %c1_11 = arith.constant 1 : index
    %4 = vector.load %arg1[%c0_9, %c1_10, %c1_11] : memref<3x18x18xf32, #tpu.memory_space<vmem>>, vector<3x16x16xf32>
    %c0_12 = arith.constant 0 : index
    %c1_13 = arith.constant 1 : index
    %c2_14 = arith.constant 2 : index
    %5 = vector.load %arg1[%c0_12, %c1_13, %c2_14] : memref<3x18x18xf32, #tpu.memory_space<vmem>>, vector<3x16x16xf32>
    %c0_15 = arith.constant 0 : index
    %c2_16 = arith.constant 2 : index
    %c0_17 = arith.constant 0 : index
    %6 = vector.load %arg1[%c0_15, %c2_16, %c0_17] : memref<3x18x18xf32, #tpu.memory_space<vmem>>, vector<3x16x16xf32>
    %c0_18 = arith.constant 0 : index
    %c2_19 = arith.constant 2 : index
    %c1_20 = arith.constant 1 : index
    %7 = vector.load %arg1[%c0_18, %c2_19, %c1_20] : memref<3x18x18xf32, #tpu.memory_space<vmem>>, vector<3x16x16xf32>
    %c0_21 = arith.constant 0 : index
    %c2_22 = arith.constant 2 : index
    %c2_23 = arith.constant 2 : index
    %8 = vector.load %arg1[%c0_21, %c2_22, %c2_23] : memref<3x18x18xf32, #tpu.memory_space<vmem>>, vector<3x16x16xf32>
    %9 = arith.minimumf %1, %2 : vector<3x16x16xf32>
    %10 = arith.maximumf %1, %2 : vector<3x16x16xf32>
    %11 = arith.minimumf %4, %5 : vector<3x16x16xf32>
    %12 = arith.maximumf %4, %5 : vector<3x16x16xf32>
    %13 = arith.minimumf %7, %8 : vector<3x16x16xf32>
    %14 = arith.maximumf %7, %8 : vector<3x16x16xf32>
    %15 = arith.minimumf %0, %9 : vector<3x16x16xf32>
    %16 = arith.maximumf %0, %9 : vector<3x16x16xf32>
    %17 = arith.minimumf %3, %11 : vector<3x16x16xf32>
    %18 = arith.maximumf %3, %11 : vector<3x16x16xf32>
    %19 = arith.minimumf %6, %13 : vector<3x16x16xf32>
    %20 = arith.maximumf %6, %13 : vector<3x16x16xf32>
    %21 = arith.minimumf %16, %10 : vector<3x16x16xf32>
    %22 = arith.maximumf %16, %10 : vector<3x16x16xf32>
    %23 = arith.minimumf %18, %12 : vector<3x16x16xf32>
    %24 = arith.maximumf %18, %12 : vector<3x16x16xf32>
    %25 = arith.minimumf %20, %14 : vector<3x16x16xf32>
    %26 = arith.maximumf %20, %14 : vector<3x16x16xf32>
    %27 = arith.maximumf %15, %17 : vector<3x16x16xf32>
    %28 = arith.minimumf %24, %26 : vector<3x16x16xf32>
    %29 = arith.minimumf %23, %25 : vector<3x16x16xf32>
    %30 = arith.maximumf %23, %25 : vector<3x16x16xf32>
    %31 = arith.maximumf %27, %19 : vector<3x16x16xf32>
    %32 = arith.maximumf %21, %29 : vector<3x16x16xf32>
    %33 = arith.minimumf %22, %28 : vector<3x16x16xf32>
    %34 = arith.minimumf %32, %30 : vector<3x16x16xf32>
    %35 = arith.minimumf %34, %33 : vector<3x16x16xf32>
    %36 = arith.maximumf %34, %33 : vector<3x16x16xf32>
    %37 = arith.maximumf %31, %35 : vector<3x16x16xf32>
    %38 = arith.minimumf %37, %36 : vector<3x16x16xf32>
    %c0_24 = arith.constant 0 : index
    %c0_25 = arith.constant 0 : index
    %c0_26 = arith.constant 0 : index
    %39 = vector.load %arg2[%c0_24, %c0_25, %c0_26] : memref<3x16x16xf32, #tpu.memory_space<vmem>>, vector<3x16x16xf32>
    tpu.vector_store %arg2[%c0_24, %c0_25, %c0_26], %38 {strides = array<i32>} : memref<3x16x16xf32, #tpu.memory_space<vmem>>, vector<3x16x16xf32>,
    return
  }
  func.func @transform_0(%arg0: i32) -> (i32, i32, i32) {
    %c0_i32 = arith.constant 0 : i32
    %c0_i32_0 = arith.constant 0 : i32
    %c0_i32_1 = arith.constant 0 : i32
    %c0_i32_2 = arith.constant 0 : i32
    return %c0_i32, %c0_i32_0, %c0_i32_1 : i32, i32, i32
  }
  func.func @transform_1(%arg0: i32) -> (i32, i32, i32) {
    %c0_i32 = arith.constant 0 : i32
    %c0_i32_0 = arith.constant 0 : i32
    %c0_i32_1 = arith.constant 0 : i32
    %c0_i32_2 = arith.constant 0 : i32
    return %c0_i32, %c0_i32_0, %c0_i32_1 : i32, i32, i32
  }
}

</mosaic_0001>

<bundles_post_ra>
// kernel: tpu_custom_call.1
= control target key start
LH: loop header
LB: loop body
LE: loop exit
PB: predicated region body
PF: predicated region fallthrough
CT: control target
= control target key end

     0   :  { %6 = vsyncpa [#allocation3], 0  ;;  %s874_s0 = inlined_call_operand.hbm [shape: f32[3,18,18], index: 0, kind: input, shape index: {}]   ;;  %s875_s1 = inlined_call_operand.hbm [shape: f32[3,16,16], index: 1, kind: output, shape index: {}]  }
   0x1   :  { %7 = vsyncpa [#allocation4], 0  ;;  %s514_s6 = smov [#allocation2]   ;;  %s466_s10 = scalar_lea.hbm %s874_s0, 1152 }
   0x2   :  { %s13_s7 = sshll.u32 %s514_s6, 4  ;;  %p467_p0 = scmp.ne.s32.totalorder %s874_s0, %s466_s10  ;;  %s14_s7 = int_to_ptr.vmem [resolvable:$true] %s13_s7 }
   0x3   :  { %p470_p1 = scmp.lt.u32.totalorder %s466_s10, %s874_s0 }
   0x5   :  { %p472_p2 = pnand %p470_p1, %p467_p0 }
   0x7   :  { %475 = shalt.err (!%p472_p2)
}
   0x8   :  { %s476_s15 = scalar_lea.vmem %s14_s7, 1152  ;;  %p481_p4 = scmp.lt.s32.totalorder %s14_s7, %s14_s7 }
   0x9   :  { %p477_p3 = scmp.ne.s32.totalorder %s14_s7, %s476_s15  ;;  %p482_p5 = scmp.lt.s32.totalorder %s476_s15, %s476_s15 }
   0xb   :  { %p483_p6 = por %p482_p5, %p481_p4 }
   0xd   :  { %p484_p7 = pnand %p483_p6, %p477_p3 }
   0xf   :  { %487 = shalt.err (!%p484_p7)
}
  0x10   :  { %s515_s16 = smov 128   ;;  %s516_s17 = smov 8  }
  0x11   :  { %19 = dma.hbm_to_vmem [thread:$0]  %s874_s0, 1152, %s14_s7, [#allocation3], %s515_s16, %s515_s16, %s516_s17  }
  0x12   :  { %510 = dma.done.wait [#allocation3], 1152  }
  0x13   :  { %511 = vsyncadd [#allocation3], 4294966144  ;;  %v544_v0 = vld [vmem:[#allocation2 + $0x1] sm:$0xff]  ;;  %v546_v1 = vld [vmem:[#allocation2 + $0x19] sm:$0xff]  ;;  %s517_s20 = smov 127   ;;  %vm437_vm0 = vcmask 130048  }
  0x14   :  { %83 = vrot.lane.b32.xlu0 %v544_v0, %s517_s20  ;;  %87 = vrot.lane.b32.xlu1 %v546_v1, %s517_s20  ;;  %v552_v2 = vld [vmem:[#allocation2 + $0x9] sm:$0xff]  ;;  %v554_v3 = vld [vmem:[#allocation2 + $0x21] sm:$0xff]  ;;  %v560_v4 = vld [vmem:[#allocation2 + $0x31] sm:$0xff]  ;;  %s518_s0 = smov [#allocation5]  }
  0x15   :  { %v562_v5 = vld [vmem:[#allocation2 + $0x39] sm:$0xff]  ;;  %v568_v6 = vld [vmem:[#allocation2 + $0x2] sm:$0xff]  ;;  %v570_v7 = vld [vmem:[#allocation2 + $0xa] sm:$0xff]  ;;  %s449_s21 = sshll.u32 %s518_s0, 4  ;;  %s450_s21 = int_to_ptr.vmem [resolvable:$true] %s449_s21 }
  0x16   :  { %v576_v8 = vld [vmem:[#allocation2 + $0x1a] sm:$0xff]  ;;  %v578_v9 = vld [vmem:[#allocation2 + $0x22] sm:$0xff]  ;;  %v584_v10 = vld [vmem:[#allocation2 + $0x32] sm:$0xff]  ;;  %s488_s22 = scalar_lea.vmem %s450_s21, 768  ;;  %p493_p9 = scmp.lt.s32.totalorder %s450_s21, %s450_s21 }
  0x17   :  { %v586_v11 = vld [vmem:[#allocation2 + $0x3a] sm:$0xff]  ;;  %v594_v13 = vld [vmem:[#allocation2 + $0x8] sm:$0xff]  ;;  %v608_v16 = vld [vmem:[#allocation2 + $0x30] sm:$0xff]  ;;  %p489_p8 = scmp.ne.s32.totalorder %s450_s21, %s488_s22  ;;  %p494_p10 = scmp.lt.s32.totalorder %s488_s22, %s488_s22 }
  0x18   :  { %85 = vrot.lane.b32.xlu0 %v552_v2, %s517_s20  ;;  %89 = vrot.lane.b32.xlu1 %v554_v3, %s517_s20  ;;  %v592_v12 = vld [vmem:[#allocation2] sm:$0xff]  ;;  %v600_v14 = vld [vmem:[#allocation2 + $0x18] sm:$0xff] }
  0x19   :  { %v602_v15 = vld [vmem:[#allocation2 + $0x20] sm:$0xff]  ;;  %v610_v17 = vld [vmem:[#allocation2 + $0x38] sm:$0xff]  ;;  %p495_p11 = por %p494_p10, %p493_p9 }
  0x1b   :  { %p496_p12 = pnand %p495_p11, %p489_p8 }
  0x1c   :  { %91 = vrot.lane.b32.xlu0 %v560_v4, %s517_s20  ;;  %93 = vrot.lane.b32.xlu1 %v562_v5, %s517_s20 }
  0x20   :  { %119 = vrot.lane.b32.xlu0 %v568_v6, %s517_s20  ;;  %121 = vrot.lane.b32.xlu1 %v570_v7, %s517_s20 }
  0x24   :  { %123 = vrot.lane.b32.xlu0 %v576_v8, %s517_s20  ;;  %125 = vrot.lane.b32.xlu1 %v578_v9, %s517_s20 }
  0x28   :  { %127 = vrot.lane.b32.xlu0 %v584_v10, %s517_s20  ;;  %129 = vrot.lane.b32.xlu1 %v586_v11, %s517_s20 }
  0x2c   :  { %47 = vrot.lane.b32.xlu0 %v592_v12, %s517_s20  ;;  %49 = vrot.lane.b32.xlu1 %v594_v13, %s517_s20 }
  0x30   :  { %51 = vrot.lane.b32.xlu0 %v600_v14, %s517_s20  ;;  %53 = vrot.lane.b32.xlu1 %v602_v15, %s517_s20 }
  0x34   :  { %55 = vrot.lane.b32.xlu0 %v608_v16, %s517_s20  ;;  %57 = vrot.lane.b32.xlu1 %v610_v17, %s517_s20 }
  0x86   :  { %v84_v18 = vpop.permute.xlu0 %83  ;;  %v88_v19 = vpop.permute.xlu1 %87 }
  0x87   :  { %v101_v20 = vmin.f32 %v544_v0, %v84_v18  ;;  %v103_v21 = vmin.f32 %v546_v1, %v88_v19  ;;  %v107_v54 = vmax.f32 %v544_v0, %v84_v18  ;;  %v109_v55 = vmax.f32 %v546_v1, %v88_v19 }
  0x89   :  { %191 = vrot.lane.b32.xlu0 %v101_v20, %s517_s20 }
  0x8a   :  { %v86_v22 = vpop.permute.xlu0 %85  ;;  %v90_v23 = vpop.permute.xlu1 %89 }
  0x8b   :  { %v102_v24 = vmin.f32 %v552_v2, %v86_v22  ;;  %v104_v25 = vmin.f32 %v554_v3, %v90_v23  ;;  %v108_v56 = vmax.f32 %v552_v2, %v86_v22  ;;  %v110_v57 = vmax.f32 %v554_v3, %v90_v23 }
  0x8d   :  { %193 = vrot.lane.b32.xlu1 %v102_v24, %s517_s20  ;;  %195 = vrot.lane.b32.xlu0 %v103_v21, %s517_s20 }
  0x8e   :  { %v92_v26 = vpop.permute.xlu0 %91  ;;  %v94_v27 = vpop.permute.xlu1 %93 }
  0x8f   :  { %v105_v28 = vmin.f32 %v560_v4, %v92_v26  ;;  %v106_v29 = vmin.f32 %v562_v5, %v94_v27  ;;  %v111_v58 = vmax.f32 %v560_v4, %v92_v26  ;;  %v112_v59 = vmax.f32 %v562_v5, %v94_v27 }
  0x91   :  { %197 = vrot.lane.b32.xlu1 %v104_v25, %s517_s20  ;;  %199 = vrot.lane.b32.xlu0 %v105_v28, %s517_s20 }
  0x92   :  { %v120_v30 = vpop.permute.xlu0 %119  ;;  %v122_v31 = vpop.permute.xlu1 %121 }
  0x93   :  { %v137_v32 = vmin.f32 %v568_v6, %v120_v30  ;;  %v138_v33 = vmin.f32 %v570_v7, %v122_v31  ;;  %v143_v60 = vmax.f32 %v568_v6, %v120_v30  ;;  %v144_v61 = vmax.f32 %v570_v7, %v122_v31 }
  0x95   :  { %201 = vrot.lane.b32.xlu1 %v106_v29, %s517_s20  ;;  %227 = vrot.lane.b32.xlu0 %v137_v32, %s517_s20 }
  0x96   :  { %v124_v34 = vpop.permute.xlu0 %123  ;;  %v126_v35 = vpop.permute.xlu1 %125 }
  0x97   :  { %v139_v36 = vmin.f32 %v576_v8, %v124_v34  ;;  %v140_v37 = vmin.f32 %v578_v9, %v126_v35  ;;  %v145_v62 = vmax.f32 %v576_v8, %v124_v34  ;;  %v146_v63 = vmax.f32 %v578_v9, %v126_v35 }
  0x99   :  { %229 = vrot.lane.b32.xlu1 %v138_v33, %s517_s20  ;;  %231 = vrot.lane.b32.xlu0 %v139_v36, %s517_s20 }
  0x9a   :  { %v128_v38 = vpop.permute.xlu0 %127  ;;  %v130_v39 = vpop.permute.xlu1 %129 }
  0x9b   :  { %v141_v40 = vmin.f32 %v584_v10, %v128_v38  ;;  %v142_v41 = vmin.f32 %v586_v11, %v130_v39  ;;  %v147_v18 = vmax.f32 %v584_v10, %v128_v38  ;;  %v148_v19 = vmax.f32 %v586_v11, %v130_v39 }
  0x9d   :  { %233 = vrot.lane.b32.xlu1 %v140_v37, %s517_s20  ;;  %235 = vrot.lane.b32.xlu0 %v141_v40, %s517_s20 }
  0x9e   :  { %v48_v42 = vpop.permute.xlu0 %47  ;;  %v50_v43 = vpop.permute.xlu1 %49 }
  0x9f   :  { %v65_v44 = vmin.f32 %v592_v12, %v48_v42  ;;  %v66_v45 = vmin.f32 %v594_v13, %v50_v43  ;;  %v71_v20 = vmax.f32 %v592_v12, %v48_v42  ;;  %v72_v21 = vmax.f32 %v594_v13, %v50_v43 }
  0xa1   :  { %237 = vrot.lane.b32.xlu1 %v142_v41, %s517_s20  ;;  %155 = vrot.lane.b32.xlu0 %v65_v44, %s517_s20 }
  0xa2   :  { %v52_v46 = vpop.permute.xlu0 %51  ;;  %v54_v47 = vpop.permute.xlu1 %53 }
  0xa3   :  { %v67_v48 = vmin.f32 %v600_v14, %v52_v46  ;;  %v68_v49 = vmin.f32 %v602_v15, %v54_v47  ;;  %v73_v22 = vmax.f32 %v600_v14, %v52_v46  ;;  %v74_v23 = vmax.f32 %v602_v15, %v54_v47 }
  0xa5   :  { %157 = vrot.lane.b32.xlu1 %v66_v45, %s517_s20  ;;  %159 = vrot.lane.b32.xlu0 %v67_v48, %s517_s20 }
  0xa6   :  { %v56_v50 = vpop.permute.xlu0 %55  ;;  %v58_v51 = vpop.permute.xlu1 %57 }
  0xa7   :  { %v69_v52 = vmin.f32 %v608_v16, %v56_v50  ;;  %v70_v53 = vmin.f32 %v610_v17, %v58_v51  ;;  %v75_v24 = vmax.f32 %v608_v16, %v56_v50  ;;  %v76_v25 = vmax.f32 %v610_v17, %v58_v51 }
  0xa9   :  { %161 = vrot.lane.b32.xlu1 %v68_v49, %s517_s20  ;;  %163 = vrot.lane.b32.xlu0 %v69_v52, %s517_s20 }
  0xad   :  { %165 = vrot.lane.b32.xlu1 %v70_v53, %s517_s20  ;;  %299 = vrot.lane.b32.xlu0 %v107_v54, %s517_s20 }
  0xb1   :  { %301 = vrot.lane.b32.xlu1 %v108_v56, %s517_s20  ;;  %303 = vrot.lane.b32.xlu0 %v109_v55, %s517_s20 }
  0xb5   :  { %305 = vrot.lane.b32.xlu1 %v110_v57, %s517_s20  ;;  %307 = vrot.lane.b32.xlu0 %v111_v58, %s517_s20 }
  0xb9   :  { %309 = vrot.lane.b32.xlu1 %v112_v59, %s517_s20  ;;  %335 = vrot.lane.b32.xlu0 %v143_v60, %s517_s20 }
  0xbd   :  { %337 = vrot.lane.b32.xlu1 %v144_v61, %s517_s20  ;;  %339 = vrot.lane.b32.xlu0 %v145_v62, %s517_s20 }
  0xc1   :  { %341 = vrot.lane.b32.xlu1 %v146_v63, %s517_s20  ;;  %343 = vrot.lane.b32.xlu0 %v147_v18, %s517_s20 }
  0xc5   :  { %345 = vrot.lane.b32.xlu1 %v148_v19, %s517_s20  ;;  %263 = vrot.lane.b32.xlu0 %v71_v20, %s517_s20 }
  0xc9   :  { %265 = vrot.lane.b32.xlu1 %v72_v21, %s517_s20  ;;  %267 = vrot.lane.b32.xlu0 %v73_v22, %s517_s20 }
  0xcd   :  { %269 = vrot.lane.b32.xlu1 %v74_v23, %s517_s20  ;;  %271 = vrot.lane.b32.xlu0 %v75_v24, %s517_s20 }
  0xd1   :  { %273 = vrot.lane.b32.xlu1 %v76_v25, %s517_s20 }
  0xfb   :  { %v192_v26 = vpop.permute.xlu0 %191 }
  0xfc   :  { %v209_v47 = vmin.f32 %v544_v0, %v192_v26  ;;  %v704_v48 = vmax.f32 %v544_v0, %v192_v26 }
  0xff   :  { %v194_v27 = vpop.permute.xlu1 %193  ;;  %v196_v28 = vpop.permute.xlu0 %195 }
 0x100   :  { %v210_v52 = vmin.f32 %v552_v2, %v194_v27  ;;  %v713_v53 = vmax.f32 %v552_v2, %v194_v27  ;;  %v211_v56 = vmin.f32 %v546_v1, %v196_v28  ;;  %v719_v0 = vmax.f32 %v546_v1, %v196_v28 }
 0x103   :  { %v198_v29 = vpop.permute.xlu1 %197  ;;  %v688_v30 = vpop.permute.xlu0 %199 }
 0x104   :  { %v212_v57 = vmin.f32 %v554_v3, %v198_v29  ;;  %v724_v59 = vmax.f32 %v554_v3, %v198_v29  ;;  %v213_v2 = vmin.f32 %v560_v4, %v688_v30  ;;  %v730_v60 = vmax.f32 %v560_v4, %v688_v30 }
 0x107   :  { %v690_v31 = vpop.permute.xlu1 %201  ;;  %v228_v32 = vpop.permute.xlu0 %227 }
 0x108   :  { %v214_v61 = vmin.f32 %v562_v5, %v690_v31  ;;  %v736_v1 = vmax.f32 %v562_v5, %v690_v31  ;;  %v245_v62 = vmin.f32 %v568_v6, %v228_v32  ;;  %v251_v63 = vmax.f32 %v568_v6, %v228_v32 }
 0x10b   :  { %v230_v33 = vpop.permute.xlu1 %229  ;;  %v232_v34 = vpop.permute.xlu0 %231 }
 0x10c   :  { %v246_v20 = vmin.f32 %v570_v7, %v230_v33  ;;  %v252_v4 = vmax.f32 %v570_v7, %v230_v33  ;;  %v247_v23 = vmin.f32 %v576_v8, %v232_v34  ;;  %v253_v24 = vmax.f32 %v576_v8, %v232_v34 }
 0x10f   :  { %v234_v35 = vpop.permute.xlu1 %233  ;;  %v692_v36 = vpop.permute.xlu0 %235 }
 0x110   :  { %v248_v26 = vmin.f32 %v578_v9, %v234_v35  ;;  %v254_v6 = vmax.f32 %v578_v9, %v234_v35  ;;  %v249_v27 = vmin.f32 %v584_v10, %v692_v36  ;;  %v754_v7 = vmax.f32 %v584_v10, %v692_v36 }
 0x113   :  { %v694_v37 = vpop.permute.xlu1 %237  ;;  %v156_v38 = vpop.permute.xlu0 %155 }
 0x114   :  { %v173_v49 = vmin.f32 %v592_v12, %v156_v38  ;;  %v758_v29 = vmax.f32 %v586_v11, %v694_v37  ;;  %v179_v8 = vmax.f32 %v592_v12, %v156_v38 }
 0x116   :  { %v365_v3 = vmax.f32 %v173_v49, %v209_v47 }
 0x117   :  { %v158_v39 = vpop.permute.xlu1 %157  ;;  %v160_v40 = vpop.permute.xlu0 %159 }
 0x118   :  { %v174_v54 = vmin.f32 %v594_v13, %v158_v39  ;;  %v175_v55 = vmin.f32 %v600_v14, %v160_v40  ;;  %v761_v30 = vmax.f32 %v365_v3, %v245_v62  ;;  %v764_v9 = vmax.f32 %v594_v13, %v158_v39 }
 0x119   :  { %v769_v34 = vmax.f32 %v600_v14, %v160_v40 }
 0x11a   :  { %v366_v21 = vmax.f32 %v174_v54, %v210_v52  ;;  %v367_v22 = vmax.f32 %v175_v55, %v211_v56 }
 0x11b   :  { %v162_v41 = vpop.permute.xlu1 %161  ;;  %v164_v42 = vpop.permute.xlu0 %163 }
 0x11c   :  { %v176_v58 = vmin.f32 %v602_v15, %v162_v41  ;;  %v177_v25 = vmin.f32 %v608_v16, %v164_v42  ;;  %v766_v33 = vmax.f32 %v366_v21, %v246_v20  ;;  %v771_v35 = vmax.f32 %v367_v22, %v247_v23 }
 0x11d   :  { %v774_v47 = vmax.f32 %v602_v15, %v162_v41  ;;  %v779_v12 = vmax.f32 %v608_v16, %v164_v42 }
 0x11e   :  { %v368_v5 = vmax.f32 %v176_v58, %v212_v57  ;;  %v781_v38 = vmax.f32 %v177_v25, %v213_v2 }
 0x11f   :  { %v166_v43 = vpop.permute.xlu1 %165  ;;  %v696_v44 = vpop.permute.xlu0 %299 }
 0x120   :  { %v178_v28 = vmin.f32 %v610_v17, %v166_v43  ;;  %v776_v49 = vmax.f32 %v368_v5, %v248_v26  ;;  %v784_v13 = vmax.f32 %v610_v17, %v166_v43  ;;  %v317_v14 = vmin.f32 %v704_v48, %v696_v44 }
 0x121   :  { %v323_v40 = vmax.f32 %v704_v48, %v696_v44 }
 0x122   :  { %v786_v39 = vmax.f32 %v178_v28, %v214_v61 }
 0x123   :  { %v698_v45 = vpop.permute.xlu1 %301  ;;  %v700_v46 = vpop.permute.xlu0 %303 }
 0x124   :  { %v794_v15 = vmin.f32 %v713_v53, %v698_v45  ;;  %v324_v16 = vmax.f32 %v713_v53, %v698_v45  ;;  %v319_v43 = vmin.f32 %v719_v0, %v700_v46  ;;  %v325_v54 = vmax.f32 %v719_v0, %v700_v46 }
 0x127   :  { %v707_v50 = vpop.permute.xlu1 %305  ;;  %v709_v51 = vpop.permute.xlu0 %307 }
 0x128   :  { %v804_v44 = vmin.f32 %v724_v59, %v707_v50  ;;  %v326_v55 = vmax.f32 %v724_v59, %v707_v50  ;;  %v810_v45 = vmin.f32 %v730_v60, %v709_v51  ;;  %v327_v53 = vmax.f32 %v730_v60, %v709_v51 }
 0x12b   :  { %v740_v18 = vpop.permute.xlu1 %309  ;;  %v336_v19 = vpop.permute.xlu0 %335 }
 0x12c   :  { %v353_v41 = vmin.f32 %v251_v63, %v336_v19  ;;  %v359_v42 = vmax.f32 %v251_v63, %v336_v19  ;;  %v816_v57 = vmin.f32 %v736_v1, %v740_v18  ;;  %v328_v46 = vmax.f32 %v736_v1, %v740_v18 }
 0x12e   :  { %v371_v2 = vmin.f32 %v323_v40, %v359_v42  ;;  %v377_v61 = vmin.f32 %v317_v14, %v353_v41  ;;  %v383_v3 = vmax.f32 %v317_v14, %v353_v41 }
 0x12f   :  { %v338_v31 = vpop.permute.xlu1 %337  ;;  %v340_v32 = vpop.permute.xlu0 %339 }
 0x130   :  { %v360_v48 = vmax.f32 %v252_v4, %v338_v31  ;;  %v354_v56 = vmin.f32 %v252_v4, %v338_v31  ;;  %v355_v0 = vmin.f32 %v253_v24, %v340_v32  ;;  %v361_v58 = vmax.f32 %v253_v24, %v340_v32 }
 0x132   :  { %v372_v19 = vmin.f32 %v324_v16, %v360_v48  ;;  %v378_v60 = vmin.f32 %v794_v15, %v354_v56  ;;  %v384_v4 = vmax.f32 %v794_v15, %v354_v56  ;;  %v373_v18 = vmin.f32 %v325_v54, %v361_v58 }
 0x133   :  { %v342_v52 = vpop.permute.xlu1 %341  ;;  %v344_v17 = vpop.permute.xlu0 %343  ;;  %v379_v22 = vmin.f32 %v319_v43, %v355_v0  ;;  %v385_v23 = vmax.f32 %v319_v43, %v355_v0 }
 0x134   :  { %v356_v50 = vmin.f32 %v254_v6, %v342_v52  ;;  %v362_v59 = vmax.f32 %v254_v6, %v342_v52  ;;  %v357_v21 = vmin.f32 %v754_v7, %v344_v17  ;;  %v363_v1 = vmax.f32 %v754_v7, %v344_v17 }
 0x136   :  { %v374_v5 = vmin.f32 %v326_v55, %v362_v59  ;;  %v380_v25 = vmin.f32 %v804_v44, %v356_v50  ;;  %v386_v40 = vmax.f32 %v804_v44, %v356_v50  ;;  %v375_v15 = vmin.f32 %v327_v53, %v363_v1 }
 0x137   :  { %v346_v62 = vpop.permute.xlu1 %345  ;;  %v264_v63 = vpop.permute.xlu0 %263  ;;  %v381_v16 = vmin.f32 %v810_v45, %v357_v21  ;;  %v387_v42 = vmax.f32 %v810_v45, %v357_v21 }
 0x138   :  { %v281_v20 = vmin.f32 %v179_v8, %v264_v63  ;;  %v287_v51 = vmax.f32 %v179_v8, %v264_v63  ;;  %v364_v26 = vmax.f32 %v758_v29, %v346_v62  ;;  %v358_v52 = vmin.f32 %v758_v29, %v346_v62 }
 0x13a   :  { %v395_v24 = vmax.f32 %v281_v20, %v377_v61  ;;  %v401_v6 = vmin.f32 %v287_v51, %v371_v2  ;;  %v376_v54 = vmin.f32 %v328_v46, %v364_v26  ;;  %v382_v46 = vmin.f32 %v816_v57, %v358_v52 }
 0x13b   :  { %v266_v28 = vpop.permute.xlu1 %265  ;;  %v268_v8 = vpop.permute.xlu0 %267  ;;  %v250_v26 = vmin.f32 %v586_v11, %v694_v37 }
 0x13c   :  { %v407_v31 = vmin.f32 %v395_v24, %v383_v3  ;;  %v282_v32 = vmin.f32 %v764_v9, %v266_v28  ;;  %v288_v14 = vmax.f32 %v764_v9, %v266_v28  ;;  %v283_v7 = vmin.f32 %v769_v34, %v268_v8 }
 0x13d   :  { %v289_v41 = vmax.f32 %v769_v34, %v268_v8  ;;  %v394_v11 = vmax.f32 %v786_v39, %v250_v26 }
 0x13e   :  { %v413_v17 = vmin.f32 %v407_v31, %v401_v6  ;;  %v396_v43 = vmax.f32 %v282_v32, %v378_v60  ;;  %v419_v48 = vmax.f32 %v407_v31, %v401_v6  ;;  %v402_v55 = vmin.f32 %v288_v14, %v372_v19 }
 0x13f   :  { %v397_v56 = vmax.f32 %v283_v7, %v379_v22  ;;  %v270_v9 = vpop.permute.xlu1 %269  ;;  %v272_v0 = vpop.permute.xlu0 %271  ;;  %v403_v34 = vmin.f32 %v289_v41, %v373_v18  ;;  %v388_v22 = vmax.f32 %v816_v57, %v358_v52 }
 0x140   :  { %v425_v58 = vmax.f32 %v761_v30, %v413_v17  ;;  %v408_v44 = vmin.f32 %v396_v43, %v384_v4  ;;  %v284_v53 = vmin.f32 %v774_v47, %v270_v9  ;;  %v290_v2 = vmax.f32 %v774_v47, %v270_v9 }
 0x141   :  { %v409_v61 = vmin.f32 %v397_v56, %v385_v23  ;;  %v285_v45 = vmin.f32 %v779_v12, %v272_v0  ;;  %v291_v29 = vmax.f32 %v779_v12, %v272_v0 }
 0x142   :  { %v431_v50 = vmin.f32 %v425_v58, %v419_v48  ;;  %v414_v59 = vmin.f32 %v408_v44, %v402_v55  ;;  %v398_v62 = vmax.f32 %v284_v53, %v380_v25  ;;  %v420_v63 = vmax.f32 %v408_v44, %v402_v55 }
 0x143   :  { %v415_v3 = vmin.f32 %v409_v61, %v403_v34  ;;  %v421_v19 = vmax.f32 %v409_v61, %v403_v34  ;;  %v399_v30 = vmax.f32 %v285_v45, %v381_v16  ;;  %v274_v20 = vpop.permute.xlu1 %273  ;;  %v404_v51 = vmin.f32 %v290_v2, %v374_v5 }
 0x144   :  { %438 = vst.msk [vmem:[#allocation5] sm:$0xff] %vm437_vm0, %v431_v50  ;;  %v426_v47 = vmax.f32 %v766_v33, %v414_v59  ;;  %v410_v60 = vmin.f32 %v398_v62, %v386_v40  ;;  %v286_v4 = vmin.f32 %v784_v13, %v274_v20  ;;  %v405_v21 = vmin.f32 %v291_v29, %v375_v15 }
 0x145   :  { %v427_v12 = vmax.f32 %v771_v35, %v415_v3  ;;  %v411_v1 = vmin.f32 %v399_v30, %v387_v42  ;;  %v292_v18 = vmax.f32 %v784_v13, %v274_v20  ;;  %v393_v33 = vmax.f32 %v781_v38, %v249_v27 }
 0x146   :  { %v432_v23 = vmin.f32 %v426_v47, %v420_v63  ;;  %v416_v24 = vmin.f32 %v410_v60, %v404_v51  ;;  %v400_v25 = vmax.f32 %v286_v4, %v382_v46  ;;  %v422_v35 = vmax.f32 %v410_v60, %v404_v51 }
 0x147   :  { %v433_v5 = vmin.f32 %v427_v12, %v421_v19  ;;  %v417_v6 = vmin.f32 %v411_v1, %v405_v21  ;;  %v406_v28 = vmin.f32 %v292_v18, %v376_v54  ;;  %v423_v8 = vmax.f32 %v411_v1, %v405_v21 }
 0x148   :  { %439 = vst.msk [vmem:[#allocation5 + $0x8] sm:$0xff] %vm437_vm0, %v432_v23  ;;  %v428_v13 = vmax.f32 %v776_v49, %v416_v24  ;;  %v412_v57 = vmin.f32 %v400_v25, %v388_v22 }
 0x149   :  { %440 = vst.msk [vmem:[#allocation5 + $0x10] sm:$0xff] %vm437_vm0, %v433_v5  ;;  %v429_v31 = vmax.f32 %v393_v33, %v417_v6 }
 0x14a   :  { %v434_v37 = vmin.f32 %v428_v13, %v422_v35  ;;  %v418_v32 = vmin.f32 %v412_v57, %v406_v28  ;;  %v424_v36 = vmax.f32 %v412_v57, %v406_v28 }
 0x14b   :  { %v435_v10 = vmin.f32 %v429_v31, %v423_v8 }
 0x14c   :  { %441 = vst.msk [vmem:[#allocation5 + $0x18] sm:$0xff] %vm437_vm0, %v434_v37  ;;  %v430_v27 = vmax.f32 %v394_v11, %v418_v32 }
 0x14d   :  { %442 = vst.msk [vmem:[#allocation5 + $0x20] sm:$0xff] %vm437_vm0, %v435_v10 }
 0x14e   :  { %v436_v49 = vmin.f32 %v430_v27, %v424_v36 }
 0x150   :  { %443 = vst.msk [vmem:[#allocation5 + $0x28] sm:$0xff] %vm437_vm0, %v436_v49 }
 0x151   :  { %499 = shalt.err (!%p496_p12)
}
 0x152   :  { %s500_s25 = scalar_lea.hbm %s875_s1, 768 }
 0x153   :  { %p501_p13 = scmp.ne.s32.totalorder %s875_s1, %s500_s25  ;;  %p504_p0 = scmp.lt.u32.totalorder %s500_s25, %s875_s1 }
 0x155   :  { %p506_p1 = pnand %p504_p0, %p501_p13 }
 0x157   :  { %509 = shalt.err (!%p506_p1)
}
 0x158   :  { %455 = dma.vmem_to_hbm [thread:$0]  %s450_s21, 768, %s875_s1, [#allocation4], %s515_s16, %s515_s16, %s516_s17  }
 0x159   :  { %512 = dma.done.wait [#allocation4], 768  }
 0x15a   :  { %513 = vsyncadd [#allocation4], 4294966528 }
 0x15b   :  { %459 = vsyncpa [#allocation3], 1 }
 0x15c   :  { %460 = vsyncpa [#allocation4], 1 }

</bundles_post_ra>
